<compile_context>
chip_gen: v6e
topology: v6e:2x2x1
jax: 0.10.0
libtpu: 0.0.40
codegen_flags: <defaults>
</compile_context>

<pallas_src>
import numpy as np
import jax
import jax.numpy as jnp
from jax.experimental import pallas as pl
from jax.experimental.pallas import tpu as pltpu

# -------------------- small synthetic configuration --------------------
BS = 2               # batch size
E = 16               # num_electrodes
C_IN = 4             # in_channels (features per electrode)
NUM_CLASSES = 3
K = 2                # Chebyshev order (GCBNet default config)
F = 32               # layers[0]
F2, F4 = F // 2, F // 4
KSIZE = 7            # conv1d kernel size
PAD = KSIZE // 2     # 3
PADR = 8             # zero-pad rows (one sublane group) on each side of the register slabs
GRPW = 64            # lanes per class group in the FC head: [h(32) | x2(16) | x3(8) | bias(1) | 0(7)]


# ============================ Pallas kernel (one sample per program) ============================
def gcbnet_kernel(x_ref, lap_ref, gcw_ref, w1_ref, w2_ref, wcat_ref, sel_ref, out_ref):
    f32 = jnp.float32

    # ---- Chebyshev K=2 graph conv; T0 (= ones) term is pre-folded into the bias row ----
    xw = jnp.dot(x_ref[...], gcw_ref[0:C_IN, :], preferred_element_type=f32)        # (E, F)
    h = jnp.dot(lap_ref[...], xw, preferred_element_type=f32)                        # (E, F)
    h = jnp.maximum(h + gcw_ref[C_IN:C_IN + 1, :], 0.0)                              # B1ReLU, dropout = id

    # ---- conv1 (kernel 7, 'same'): in-register zero-padded taps, 7 accumulated dots ----
    zf = jnp.zeros((PADR, F), f32)
    hp = jnp.concatenate([zf, h, zf], axis=0)                                        # (E + 16, F)
    acc1 = jnp.zeros((E, F2), f32)
    for t in range(KSIZE):
        off = t - PAD
        tap = hp[PADR + off:PADR + off + E, :]                                       # h[e + off] (zero pad)
        acc1 = acc1 + jnp.dot(tap, w1_ref[t * F:(t + 1) * F, :],
                              preferred_element_type=f32)
    x1 = jnp.maximum(acc1 + w1_ref[KSIZE * F:KSIZE * F + 1, :], 0.0)                 # (E, F2)

    # ---- maxpool(2,2) fused into conv2 taps (pooled values valid at even rows) ----
    zp = jnp.zeros((PADR, F2), f32)
    xp = jnp.concatenate([zp, x1, zp], axis=0)                                       # (E + 16, F2)
    acc2 = jnp.zeros((E, F4), f32)
    x2w = None
    for t in range(KSIZE):
        off = t - PAD
        a = xp[PADR + 2 * off:PADR + 2 * off + E, :]
        b = xp[PADR + 2 * off + 1:PADR + 2 * off + 1 + E, :]
        ptap = jnp.maximum(a, b)                                                     # pooled tap
        if off == 0:
            x2w = ptap                                                               # x2 at even rows
        acc2 = acc2 + jnp.dot(ptap, w2_ref[t * F2:(t + 1) * F2, :],
                              preferred_element_type=f32)
    x3 = jnp.maximum(acc2 + w2_ref[KSIZE * F2:KSIZE * F2 + 1, :], 0.0)               # (E, F4)

    # ---- FC head: per-class weight-map multiply, then group-sum + row-reduce matmuls ----
    blane = (jax.lax.broadcasted_iota(jnp.int32, (E, 1), 0) == 0).astype(f32)        # fc-bias hook (row 0)
    zg = jnp.zeros((E, GRPW - (F + F2 + F4 + 1)), f32)
    grp = jnp.concatenate([h, x2w, x3, blane, zg], axis=1)                           # (E, 64)
    rep = jnp.concatenate([grp] * NUM_CLASSES, axis=1)                               # (E, 192)
    prod = rep * wcat_ref[...]                                                       # (E, 192)
    res = jnp.dot(prod, sel_ref[...], preferred_element_type=f32)                    # (E, 8) per-class lane sums
    ones = jnp.full((8, E), 1.0, f32)
    out_ref[...] = jnp.dot(ones, res, preferred_element_type=f32)                    # (8, 8), row-duplicated


# ============================ parameter initialization ============================
def init_params(key):
    ks = jax.random.split(key, 7)

    def xavier(k_, shape):
        bound = float(np.sqrt(6.0 / (shape[0] + shape[1])))
        return jax.random.uniform(k_, shape, jnp.float32, -bound, bound)

    def kaiming_conv(k_, shape):  # (out, in, ksize), fan_in, relu gain
        fan_in = shape[1] * shape[2]
        bound = float(np.sqrt(6.0 / fan_in))
        return jax.random.uniform(k_, shape, jnp.float32, -bound, bound)

    adj = xavier(ks[0], (E, E))
    adj_bias = 0.1 * jax.random.truncated_normal(ks[1], -2.0, 2.0, (1,), jnp.float32)
    w_gc = xavier(ks[2], (K * C_IN, F))
    w1 = kaiming_conv(ks[3], (F2, F, KSIZE))
    b1 = jnp.zeros((F2,), jnp.float32)
    w2 = kaiming_conv(ks[4], (F4, F2, KSIZE))
    b2 = jnp.zeros((F4,), jnp.float32)
    d_in = E * (F // 8 * 11)
    bnd = float(1.0 / np.sqrt(d_in))
    w_fc = jax.random.uniform(ks[5], (NUM_CLASSES, d_in), jnp.float32, -bnd, bnd)
    b_fc = jax.random.uniform(ks[6], (NUM_CLASSES,), jnp.float32, -bnd, bnd)
    brelu = jnp.zeros((F,), jnp.float32)
    return dict(adj=adj, adj_bias=adj_bias, w_gc=w_gc, w1=w1, b1=b1, w2=w2, b2=b2,
                w_fc=w_fc, b_fc=b_fc, brelu=brelu)


# ============================ parameter packing ============================
def pack_params(p):
    # --- normalized Laplacian of relu(adj + adj_bias): input-independent -> precompute ---
    adj = np.maximum(np.asarray(p['adj'], np.float32)
                     + np.float32(np.asarray(p['adj_bias'])[0]), np.float32(0.0))
    d = adj.sum(axis=1)
    d_re = (1.0 / np.sqrt(d + 1e-5)).astype(np.float32)
    lap = (np.eye(E, dtype=np.float32) - (d_re[:, None] * adj) * d_re[None, :]).astype(np.float32)

    # --- graph-conv weight, torch rows indexed c*K + j; fold constant T0 (= ones) term ---
    wgc = np.asarray(p['w_gc']).reshape(C_IN, K, F)        # [c, j, f]
    wgc0, wgc1 = wgc[:, 0, :], wgc[:, 1, :]                # (C, F) each
    brelu_eff = np.asarray(p['brelu']) + wgc0.sum(axis=0)
    gcw = np.zeros((8, F), np.float32)
    gcw[0:C_IN, :] = wgc1
    gcw[C_IN, :] = brelu_eff

    # --- conv1 / conv2 tap weights, row-stacked per tap (natural width), bias in trailing row ---
    w1 = np.asarray(p['w1'])                               # (F2, F, 7)
    w1pack = np.zeros((KSIZE * F + 8, F2), np.float32)
    for t in range(KSIZE):
        w1pack[t * F:(t + 1) * F, :] = w1[:, :, t].T
    w1pack[KSIZE * F, :] = np.asarray(p['b1'])

    w2 = np.asarray(p['w2'])                               # (F4, F2, 7)
    w2pack = np.zeros((KSIZE * F2 + 8, F4), np.float32)
    for t in range(KSIZE):
        w2pack[t * F2:(t + 1) * F2, :] = w2[:, :, t].T
    w2pack[KSIZE * F2, :] = np.asarray(p['b2'])

    # --- FC head: per-class (E, GRPW) weight maps aligned to [h | x2 | x3 | bias-hook] lanes ---
    wfc = np.asarray(p['w_fc'])                            # (NC, 704), torch flatten order
    bfc = np.asarray(p['b_fc'])
    D1, D2 = F * E, F2 * (E // 2)
    A = wfc[:, :D1].reshape(NUM_CLASSES, F, E)             # [n, f, e]
    Bm = wfc[:, D1:D1 + D2].reshape(NUM_CLASSES, F2, E // 2)
    Cm = wfc[:, D1 + D2:].reshape(NUM_CLASSES, F4, E // 2)

    wcat = np.zeros((E, NUM_CLASSES * GRPW), np.float32)
    sel = np.zeros((NUM_CLASSES * GRPW, 8), np.float32)
    for n in range(NUM_CLASSES):
        base = n * GRPW
        wcat[:, base:base + F] = A[n].T                                   # h part
        wcat[0:E:2, base + F:base + F + F2] = Bm[n].T                     # x2 part (even rows only)
        wcat[0:E:2, base + F + F2:base + F + F2 + F4] = Cm[n].T           # x3 part (even rows only)
        wcat[0, base + F + F2 + F4] = bfc[n]                              # fc bias via bias-hook lane
        sel[base:base + GRPW, n] = 1.0

    return dict(lap=jnp.asarray(lap),
                gcw=jnp.asarray(gcw),
                w1pack=jnp.asarray(w1pack),
                w2pack=jnp.asarray(w2pack),
                wcat=jnp.asarray(wcat),
                sel=jnp.asarray(sel))


# ============================ wrapper ============================
def gcbnet_forward(x, pk):
    x_cat = x.reshape(BS * E, C_IN)                         # sample-major row stacking (free reshape)
    in_specs = [
        pl.BlockSpec((E, C_IN), lambda i: (i, 0)),                          # x: one sample per step
        pl.BlockSpec((E, E), lambda i: (0, 0)),                             # lap (resident)
        pl.BlockSpec((8, F), lambda i: (0, 0)),                             # gc weight + bias
        pl.BlockSpec((KSIZE * F + 8, F2), lambda i: (0, 0)),                # conv1 taps + bias
        pl.BlockSpec((KSIZE * F2 + 8, F4), lambda i: (0, 0)),               # conv2 taps + bias
        pl.BlockSpec((E, NUM_CLASSES * GRPW), lambda i: (0, 0)),            # fc weight map
        pl.BlockSpec((NUM_CLASSES * GRPW, 8), lambda i: (0, 0)),            # class-group selector
    ]
    out = pl.pallas_call(
        gcbnet_kernel,
        out_shape=jax.ShapeDtypeStruct((BS * 8, 8), jnp.float32),
        grid=(BS,),
        in_specs=in_specs,
        out_specs=pl.BlockSpec((8, 8), lambda i: (i, 0)),
        compiler_params=pltpu.CompilerParams(dimension_semantics=("parallel",)),
    )(x_cat, pk['lap'], pk['gcw'], pk['w1pack'], pk['w2pack'], pk['wcat'], pk['sel'])
    return out.reshape(BS, 8, 8)[:, 0, :NUM_CLASSES]


# ============================ pure-JAX reference ============================
def reference_forward(x, p):
    bs = x.shape[0]
    adj = jnp.maximum(p['adj'] + p['adj_bias'][0], 0.0)
    d = jnp.sum(adj, axis=1)
    d_re = 1.0 / jnp.sqrt(d + 1e-5)
    lap = jnp.eye(E) - (d_re[:, None] * adj) * d_re[None, :]
    # graph conv (K == 2 branch of the torch module)
    t0 = jnp.ones_like(x)
    t1 = jnp.einsum('ef,bfc->bec', lap, x)
    cp = jnp.stack([t0, t1], axis=1)                               # (b, K, E, C)
    cp = jnp.transpose(cp, (0, 2, 3, 1)).reshape(bs, E, C_IN * K)
    h = cp @ p['w_gc']
    h = jnp.maximum(h + p['brelu'][None, None, :], 0.0)
    xt = jnp.transpose(h, (0, 2, 1))                               # (b, F, E)  (NCL)
    x1 = jax.lax.conv_general_dilated(xt, p['w1'], (1,), 'SAME',
                                      dimension_numbers=('NCH', 'OIH', 'NCH'))
    x1 = jnp.maximum(x1 + p['b1'][None, :, None], 0.0)
    x2 = jnp.max(x1.reshape(bs, F2, E // 2, 2), axis=-1)
    x3 = jax.lax.conv_general_dilated(x2, p['w2'], (1,), 'SAME',
                                      dimension_numbers=('NCH', 'OIH', 'NCH'))
    x3 = jnp.maximum(x3 + p['b2'][None, :, None], 0.0)
    cat = jnp.concatenate([xt.reshape(bs, -1), x2.reshape(bs, -1), x3.reshape(bs, -1)],
                          axis=1)
    return cat @ p['w_fc'].T + p['b_fc'][None, :]


if __name__ == "__main__":
    key = jax.random.PRNGKey(0)
    kx, kp = jax.random.split(key)
    x = jax.random.normal(kx, (BS, E, C_IN), jnp.float32)
    raw = init_params(kp)
    packed = pack_params(raw)

    # TODO(synk): dropout is treated as identity (eval/inference semantics only).
    out = gcbnet_forward(x, packed)
    out = jax.block_until_ready(out)

    ref = reference_forward(x, raw)
    assert out.shape == (BS, NUM_CLASSES)
    np.testing.assert_allclose(np.asarray(out), np.asarray(ref), rtol=2e-3, atol=2e-3)
    print("KERNEL_OK")
</pallas_src>

<mosaic_0001>
module attributes {stable_mosaic.version = 11 : i64} {
  func.func @gcbnet_kernel(%arg0: i32, %arg1: memref<16x4xf32, #tpu.memory_space<vmem>>, %arg2: memref<16x16xf32, #tpu.memory_space<vmem>>, %arg3: memref<8x32xf32, #tpu.memory_space<vmem>>, %arg4: memref<232x16xf32, #tpu.memory_space<vmem>>, %arg5: memref<120x8xf32, #tpu.memory_space<vmem>>, %arg6: memref<16x192xf32, #tpu.memory_space<vmem>>, %arg7: memref<192x8xf32, #tpu.memory_space<vmem>>, %arg8: memref<8x8xf32, #tpu.memory_space<vmem>>) attributes {dimension_semantics = [#tpu.dimension_semantics<parallel>], iteration_bounds = array<i64: 2>, scalar_prefetch = 0 : i64, scratch_operands = 0 : i64, tpu.core_type = #tpu.core_type<tc>, window_params = [{transform_indices = @transform_0, window_bounds = array<i64: 16, 4>}, {pipeline_mode = #tpu.pipeline_mode<synchronous>, transform_indices = @transform_1, window_bounds = array<i64: 16, 16>}, {pipeline_mode = #tpu.pipeline_mode<synchronous>, transform_indices = @transform_2, window_bounds = array<i64: 8, 32>}, {pipeline_mode = #tpu.pipeline_mode<synchronous>, transform_indices = @transform_3, window_bounds = array<i64: 232, 16>}, {pipeline_mode = #tpu.pipeline_mode<synchronous>, transform_indices = @transform_4, window_bounds = array<i64: 120, 8>}, {pipeline_mode = #tpu.pipeline_mode<synchronous>, transform_indices = @transform_5, window_bounds = array<i64: 16, 192>}, {pipeline_mode = #tpu.pipeline_mode<synchronous>, transform_indices = @transform_6, window_bounds = array<i64: 192, 8>}, {transform_indices = @transform_7, window_bounds = array<i64: 8, 8>}]} {
    %c0 = arith.constant 0 : index
    %c0_0 = arith.constant 0 : index
    %0 = vector.load %arg1[%c0, %c0_0] : memref<16x4xf32, #tpu.memory_space<vmem>>, vector<16x4xf32>
    %c0_1 = arith.constant 0 : index
    %c0_2 = arith.constant 0 : index
    %1 = vector.load %arg3[%c0_1, %c0_2] : memref<8x32xf32, #tpu.memory_space<vmem>>, vector<4x32xf32>
    %cst = arith.constant dense<0.000000e+00> : vector<16x32xf32>
    %2 = tpu.matmul %0, %1, %cst {dimension_numbers = #tpu.dot_dimension_numbers<[1], [0], [0], [1], [0, 0, 1, 1], [], []>} : vector<16x4xf32>, vector<4x32xf32>, vector<16x32xf32> -> vector<16x32xf32>
    %c0_3 = arith.constant 0 : index
    %c0_4 = arith.constant 0 : index
    %3 = vector.load %arg2[%c0_3, %c0_4] : memref<16x16xf32, #tpu.memory_space<vmem>>, vector<16x16xf32>
    %cst_5 = arith.constant dense<0.000000e+00> : vector<16x32xf32>
    %4 = tpu.matmul %3, %2, %cst_5 {dimension_numbers = #tpu.dot_dimension_numbers<[1], [0], [0], [1], [0, 0, 1, 1], [], []>} : vector<16x16xf32>, vector<16x32xf32>, vector<16x32xf32> -> vector<16x32xf32>
    %c4 = arith.constant 4 : index
    %c0_6 = arith.constant 0 : index
    %5 = vector.load %arg3[%c4, %c0_6] : memref<8x32xf32, #tpu.memory_space<vmem>>, vector<1x32xf32>
    %6 = vector.broadcast %5 : vector<1x32xf32> to vector<16x32xf32>
    %7 = arith.addf %4, %6 : vector<16x32xf32>
    %cst_7 = arith.constant 0.000000e+00 : f32
    %8 = vector.broadcast %cst_7 : f32 to vector<16x32xf32>
    %9 = arith.maximumf %7, %8 : vector<16x32xf32>
    %cst_8 = arith.constant 0.000000e+00 : f32
    %10 = vector.broadcast %cst_8 : f32 to vector<8x32xf32>
    %11 = tpu.concatenate %10, %9, %10 in 0 : vector<8x32xf32>, vector<16x32xf32>, vector<8x32xf32> -> vector<32x32xf32>
    %cst_9 = arith.constant 0.000000e+00 : f32
    %12 = vector.broadcast %cst_9 : f32 to vector<16x16xf32>
    %13 = vector.extract_strided_slice %11 {offsets = [5, 0], sizes = [16, 32], strides = [1, 1]} : vector<32x32xf32> to vector<16x32xf32>
    %c0_10 = arith.constant 0 : index
    %c0_11 = arith.constant 0 : index
    %14 = vector.load %arg4[%c0_10, %c0_11] : memref<232x16xf32, #tpu.memory_space<vmem>>, vector<32x16xf32>
    %cst_12 = arith.constant dense<0.000000e+00> : vector<16x16xf32>
    %15 = tpu.matmul %13, %14, %cst_12 {dimension_numbers = #tpu.dot_dimension_numbers<[1], [0], [0], [1], [0, 0, 1, 1], [], []>} : vector<16x32xf32>, vector<32x16xf32>, vector<16x16xf32> -> vector<16x16xf32>
    %16 = arith.addf %12, %15 : vector<16x16xf32>
    %17 = vector.extract_strided_slice %11 {offsets = [6, 0], sizes = [16, 32], strides = [1, 1]} : vector<32x32xf32> to vector<16x32xf32>
    %c32 = arith.constant 32 : index
    %c0_13 = arith.constant 0 : index
    %18 = vector.load %arg4[%c32, %c0_13] : memref<232x16xf32, #tpu.memory_space<vmem>>, vector<32x16xf32>
    %cst_14 = arith.constant dense<0.000000e+00> : vector<16x16xf32>
    %19 = tpu.matmul %17, %18, %cst_14 {dimension_numbers = #tpu.dot_dimension_numbers<[1], [0], [0], [1], [0, 0, 1, 1], [], []>} : vector<16x32xf32>, vector<32x16xf32>, vector<16x16xf32> -> vector<16x16xf32>
    %20 = arith.addf %16, %19 : vector<16x16xf32>
    %21 = vector.extract_strided_slice %11 {offsets = [7, 0], sizes = [16, 32], strides = [1, 1]} : vector<32x32xf32> to vector<16x32xf32>
    %c64 = arith.constant 64 : index
    %c0_15 = arith.constant 0 : index
    %22 = vector.load %arg4[%c64, %c0_15] : memref<232x16xf32, #tpu.memory_space<vmem>>, vector<32x16xf32>
    %cst_16 = arith.constant dense<0.000000e+00> : vector<16x16xf32>
    %23 = tpu.matmul %21, %22, %cst_16 {dimension_numbers = #tpu.dot_dimension_numbers<[1], [0], [0], [1], [0, 0, 1, 1], [], []>} : vector<16x32xf32>, vector<32x16xf32>, vector<16x16xf32> -> vector<16x16xf32>
    %24 = arith.addf %20, %23 : vector<16x16xf32>
    %25 = vector.extract_strided_slice %11 {offsets = [8, 0], sizes = [16, 32], strides = [1, 1]} : vector<32x32xf32> to vector<16x32xf32>
    %c96 = arith.constant 96 : index
    %c0_17 = arith.constant 0 : index
    %26 = vector.load %arg4[%c96, %c0_17] : memref<232x16xf32, #tpu.memory_space<vmem>>, vector<32x16xf32>
    %cst_18 = arith.constant dense<0.000000e+00> : vector<16x16xf32>
    %27 = tpu.matmul %25, %26, %cst_18 {dimension_numbers = #tpu.dot_dimension_numbers<[1], [0], [0], [1], [0, 0, 1, 1], [], []>} : vector<16x32xf32>, vector<32x16xf32>, vector<16x16xf32> -> vector<16x16xf32>
    %28 = arith.addf %24, %27 : vector<16x16xf32>
    %29 = vector.extract_strided_slice %11 {offsets = [9, 0], sizes = [16, 32], strides = [1, 1]} : vector<32x32xf32> to vector<16x32xf32>
    %c128 = arith.constant 128 : index
    %c0_19 = arith.constant 0 : index
    %30 = vector.load %arg4[%c128, %c0_19] : memref<232x16xf32, #tpu.memory_space<vmem>>, vector<32x16xf32>
    %cst_20 = arith.constant dense<0.000000e+00> : vector<16x16xf32>
    %31 = tpu.matmul %29, %30, %cst_20 {dimension_numbers = #tpu.dot_dimension_numbers<[1], [0], [0], [1], [0, 0, 1, 1], [], []>} : vector<16x32xf32>, vector<32x16xf32>, vector<16x16xf32> -> vector<16x16xf32>
    %32 = arith.addf %28, %31 : vector<16x16xf32>
    %33 = vector.extract_strided_slice %11 {offsets = [10, 0], sizes = [16, 32], strides = [1, 1]} : vector<32x32xf32> to vector<16x32xf32>
    %c160 = arith.constant 160 : index
    %c0_21 = arith.constant 0 : index
    %34 = vector.load %arg4[%c160, %c0_21] : memref<232x16xf32, #tpu.memory_space<vmem>>, vector<32x16xf32>
    %cst_22 = arith.constant dense<0.000000e+00> : vector<16x16xf32>
    %35 = tpu.matmul %33, %34, %cst_22 {dimension_numbers = #tpu.dot_dimension_numbers<[1], [0], [0], [1], [0, 0, 1, 1], [], []>} : vector<16x32xf32>, vector<32x16xf32>, vector<16x16xf32> -> vector<16x16xf32>
    %36 = arith.addf %32, %35 : vector<16x16xf32>
    %37 = vector.extract_strided_slice %11 {offsets = [11, 0], sizes = [16, 32], strides = [1, 1]} : vector<32x32xf32> to vector<16x32xf32>
    %c192 = arith.constant 192 : index
    %c0_23 = arith.constant 0 : index
    %38 = vector.load %arg4[%c192, %c0_23] : memref<232x16xf32, #tpu.memory_space<vmem>>, vector<32x16xf32>
    %cst_24 = arith.constant dense<0.000000e+00> : vector<16x16xf32>
    %39 = tpu.matmul %37, %38, %cst_24 {dimension_numbers = #tpu.dot_dimension_numbers<[1], [0], [0], [1], [0, 0, 1, 1], [], []>} : vector<16x32xf32>, vector<32x16xf32>, vector<16x16xf32> -> vector<16x16xf32>
    %40 = arith.addf %36, %39 : vector<16x16xf32>
    %c224 = arith.constant 224 : index
    %c0_25 = arith.constant 0 : index
    %41 = vector.load %arg4[%c224, %c0_25] : memref<232x16xf32, #tpu.memory_space<vmem>>, vector<1x16xf32>
    %42 = vector.broadcast %41 : vector<1x16xf32> to vector<16x16xf32>
    %43 = arith.addf %40, %42 : vector<16x16xf32>
    %cst_26 = arith.constant 0.000000e+00 : f32
    %44 = vector.broadcast %cst_26 : f32 to vector<16x16xf32>
    %45 = arith.maximumf %43, %44 : vector<16x16xf32>
    %cst_27 = arith.constant 0.000000e+00 : f32
    %46 = vector.broadcast %cst_27 : f32 to vector<8x16xf32>
    %47 = tpu.concatenate %46, %45, %46 in 0 : vector<8x16xf32>, vector<16x16xf32>, vector<8x16xf32> -> vector<32x16xf32>
    %cst_28 = arith.constant 0.000000e+00 : f32
    %48 = vector.broadcast %cst_28 : f32 to vector<16x8xf32>
    %49 = vector.extract_strided_slice %47 {offsets = [2, 0], sizes = [16, 16], strides = [1, 1]} : vector<32x16xf32> to vector<16x16xf32>
    %50 = vector.extract_strided_slice %47 {offsets = [3, 0], sizes = [16, 16], strides = [1, 1]} : vector<32x16xf32> to vector<16x16xf32>
    %51 = arith.maximumf %49, %50 : vector<16x16xf32>
    %c0_29 = arith.constant 0 : index
    %c0_30 = arith.constant 0 : index
    %52 = vector.load %arg5[%c0_29, %c0_30] : memref<120x8xf32, #tpu.memory_space<vmem>>, vector<16x8xf32>
    %cst_31 = arith.constant dense<0.000000e+00> : vector<16x8xf32>
    %53 = tpu.matmul %51, %52, %cst_31 {dimension_numbers = #tpu.dot_dimension_numbers<[1], [0], [0], [1], [0, 0, 1, 1], [], []>} : vector<16x16xf32>, vector<16x8xf32>, vector<16x8xf32> -> vector<16x8xf32>
    %54 = arith.addf %48, %53 : vector<16x8xf32>
    %55 = vector.extract_strided_slice %47 {offsets = [4, 0], sizes = [16, 16], strides = [1, 1]} : vector<32x16xf32> to vector<16x16xf32>
    %56 = vector.extract_strided_slice %47 {offsets = [5, 0], sizes = [16, 16], strides = [1, 1]} : vector<32x16xf32> to vector<16x16xf32>
    %57 = arith.maximumf %55, %56 : vector<16x16xf32>
    %c16 = arith.constant 16 : index
    %c0_32 = arith.constant 0 : index
    %58 = vector.load %arg5[%c16, %c0_32] : memref<120x8xf32, #tpu.memory_space<vmem>>, vector<16x8xf32>
    %cst_33 = arith.constant dense<0.000000e+00> : vector<16x8xf32>
    %59 = tpu.matmul %57, %58, %cst_33 {dimension_numbers = #tpu.dot_dimension_numbers<[1], [0], [0], [1], [0, 0, 1, 1], [], []>} : vector<16x16xf32>, vector<16x8xf32>, vector<16x8xf32> -> vector<16x8xf32>
    %60 = arith.addf %54, %59 : vector<16x8xf32>
    %61 = vector.extract_strided_slice %47 {offsets = [6, 0], sizes = [16, 16], strides = [1, 1]} : vector<32x16xf32> to vector<16x16xf32>
    %62 = vector.extract_strided_slice %47 {offsets = [7, 0], sizes = [16, 16], strides = [1, 1]} : vector<32x16xf32> to vector<16x16xf32>
    %63 = arith.maximumf %61, %62 : vector<16x16xf32>
    %c32_34 = arith.constant 32 : index
    %c0_35 = arith.constant 0 : index
    %64 = vector.load %arg5[%c32_34, %c0_35] : memref<120x8xf32, #tpu.memory_space<vmem>>, vector<16x8xf32>
    %cst_36 = arith.constant dense<0.000000e+00> : vector<16x8xf32>
    %65 = tpu.matmul %63, %64, %cst_36 {dimension_numbers = #tpu.dot_dimension_numbers<[1], [0], [0], [1], [0, 0, 1, 1], [], []>} : vector<16x16xf32>, vector<16x8xf32>, vector<16x8xf32> -> vector<16x8xf32>
    %66 = arith.addf %60, %65 : vector<16x8xf32>
    %67 = vector.extract_strided_slice %47 {offsets = [8, 0], sizes = [16, 16], strides = [1, 1]} : vector<32x16xf32> to vector<16x16xf32>
    %68 = vector.extract_strided_slice %47 {offsets = [9, 0], sizes = [16, 16], strides = [1, 1]} : vector<32x16xf32> to vector<16x16xf32>
    %69 = arith.maximumf %67, %68 : vector<16x16xf32>
    %c48 = arith.constant 48 : index
    %c0_37 = arith.constant 0 : index
    %70 = vector.load %arg5[%c48, %c0_37] : memref<120x8xf32, #tpu.memory_space<vmem>>, vector<16x8xf32>
    %cst_38 = arith.constant dense<0.000000e+00> : vector<16x8xf32>
    %71 = tpu.matmul %69, %70, %cst_38 {dimension_numbers = #tpu.dot_dimension_numbers<[1], [0], [0], [1], [0, 0, 1, 1], [], []>} : vector<16x16xf32>, vector<16x8xf32>, vector<16x8xf32> -> vector<16x8xf32>
    %72 = arith.addf %66, %71 : vector<16x8xf32>
    %73 = vector.extract_strided_slice %47 {offsets = [10, 0], sizes = [16, 16], strides = [1, 1]} : vector<32x16xf32> to vector<16x16xf32>
    %74 = vector.extract_strided_slice %47 {offsets = [11, 0], sizes = [16, 16], strides = [1, 1]} : vector<32x16xf32> to vector<16x16xf32>
    %75 = arith.maximumf %73, %74 : vector<16x16xf32>
    %c64_39 = arith.constant 64 : index
    %c0_40 = arith.constant 0 : index
    %76 = vector.load %arg5[%c64_39, %c0_40] : memref<120x8xf32, #tpu.memory_space<vmem>>, vector<16x8xf32>
    %cst_41 = arith.constant dense<0.000000e+00> : vector<16x8xf32>
    %77 = tpu.matmul %75, %76, %cst_41 {dimension_numbers = #tpu.dot_dimension_numbers<[1], [0], [0], [1], [0, 0, 1, 1], [], []>} : vector<16x16xf32>, vector<16x8xf32>, vector<16x8xf32> -> vector<16x8xf32>
    %78 = arith.addf %72, %77 : vector<16x8xf32>
    %79 = vector.extract_strided_slice %47 {offsets = [12, 0], sizes = [16, 16], strides = [1, 1]} : vector<32x16xf32> to vector<16x16xf32>
    %80 = vector.extract_strided_slice %47 {offsets = [13, 0], sizes = [16, 16], strides = [1, 1]} : vector<32x16xf32> to vector<16x16xf32>
    %81 = arith.maximumf %79, %80 : vector<16x16xf32>
    %c80 = arith.constant 80 : index
    %c0_42 = arith.constant 0 : index
    %82 = vector.load %arg5[%c80, %c0_42] : memref<120x8xf32, #tpu.memory_space<vmem>>, vector<16x8xf32>
    %cst_43 = arith.constant dense<0.000000e+00> : vector<16x8xf32>
    %83 = tpu.matmul %81, %82, %cst_43 {dimension_numbers = #tpu.dot_dimension_numbers<[1], [0], [0], [1], [0, 0, 1, 1], [], []>} : vector<16x16xf32>, vector<16x8xf32>, vector<16x8xf32> -> vector<16x8xf32>
    %84 = arith.addf %78, %83 : vector<16x8xf32>
    %85 = vector.extract_strided_slice %47 {offsets = [14, 0], sizes = [16, 16], strides = [1, 1]} : vector<32x16xf32> to vector<16x16xf32>
    %86 = vector.extract_strided_slice %47 {offsets = [15, 0], sizes = [16, 16], strides = [1, 1]} : vector<32x16xf32> to vector<16x16xf32>
    %87 = arith.maximumf %85, %86 : vector<16x16xf32>
    %c96_44 = arith.constant 96 : index
    %c0_45 = arith.constant 0 : index
    %88 = vector.load %arg5[%c96_44, %c0_45] : memref<120x8xf32, #tpu.memory_space<vmem>>, vector<16x8xf32>
    %cst_46 = arith.constant dense<0.000000e+00> : vector<16x8xf32>
    %89 = tpu.matmul %87, %88, %cst_46 {dimension_numbers = #tpu.dot_dimension_numbers<[1], [0], [0], [1], [0, 0, 1, 1], [], []>} : vector<16x16xf32>, vector<16x8xf32>, vector<16x8xf32> -> vector<16x8xf32>
    %90 = arith.addf %84, %89 : vector<16x8xf32>
    %c112 = arith.constant 112 : index
    %c0_47 = arith.constant 0 : index
    %91 = vector.load %arg5[%c112, %c0_47] : memref<120x8xf32, #tpu.memory_space<vmem>>, vector<1x8xf32>
    %92 = vector.broadcast %91 : vector<1x8xf32> to vector<16x8xf32>
    %93 = arith.addf %90, %92 : vector<16x8xf32>
    %cst_48 = arith.constant 0.000000e+00 : f32
    %94 = vector.broadcast %cst_48 : f32 to vector<16x8xf32>
    %95 = arith.maximumf %93, %94 : vector<16x8xf32>
    %96 = tpu.iota {dimensions = array<i32: 0>} : vector<16x1xi32>
    %c0_i32 = arith.constant 0 : i32
    %97 = vector.broadcast %c0_i32 : i32 to vector<16x1xi32>
    %98 = arith.cmpi eq, %96, %97 : vector<16x1xi32>
    %99 = arith.extui %98 : vector<16x1xi1> to vector<16x1xi32>
    %100 = arith.sitofp %99 : vector<16x1xi32> to vector<16x1xf32>
    %cst_49 = arith.constant 0.000000e+00 : f32
    %101 = vector.broadcast %cst_49 : f32 to vector<16x7xf32>
    %102 = tpu.concatenate %9, %69, %95, %100, %101 in 1 : vector<16x32xf32>, vector<16x16xf32>, vector<16x8xf32>, vector<16x1xf32>, vector<16x7xf32> -> vector<16x64xf32>
    %103 = tpu.concatenate %102, %102, %102 in 1 : vector<16x64xf32>, vector<16x64xf32>, vector<16x64xf32> -> vector<16x192xf32>
    %c0_50 = arith.constant 0 : index
    %c0_51 = arith.constant 0 : index
    %104 = vector.load %arg6[%c0_50, %c0_51] : memref<16x192xf32, #tpu.memory_space<vmem>>, vector<16x192xf32>
    %105 = arith.mulf %103, %104 : vector<16x192xf32>
    %c0_52 = arith.constant 0 : index
    %c0_53 = arith.constant 0 : index
    %106 = vector.load %arg7[%c0_52, %c0_53] : memref<192x8xf32, #tpu.memory_space<vmem>>, vector<192x8xf32>
    %cst_54 = arith.constant dense<0.000000e+00> : vector<16x8xf32>
    %107 = tpu.matmul %105, %106, %cst_54 {dimension_numbers = #tpu.dot_dimension_numbers<[1], [0], [0], [1], [0, 0, 1, 1], [], []>} : vector<16x192xf32>, vector<192x8xf32>, vector<16x8xf32> -> vector<16x8xf32>
    %cst_55 = arith.constant 1.000000e+00 : f32
    %108 = vector.broadcast %cst_55 : f32 to vector<8x16xf32>
    %cst_56 = arith.constant dense<0.000000e+00> : vector<8x8xf32>
    %109 = tpu.matmul %108, %107, %cst_56 {dimension_numbers = #tpu.dot_dimension_numbers<[1], [0], [0], [1], [0, 0, 1, 1], [], []>} : vector<8x16xf32>, vector<16x8xf32>, vector<8x8xf32> -> vector<8x8xf32>
    %c0_57 = arith.constant 0 : index
    %c0_58 = arith.constant 0 : index
    %110 = vector.load %arg8[%c0_57, %c0_58] : memref<8x8xf32, #tpu.memory_space<vmem>>, vector<8x8xf32>
    tpu.vector_store %arg8[%c0_57, %c0_58], %109 {strides = array<i32>} : memref<8x8xf32, #tpu.memory_space<vmem>>, vector<8x8xf32>,
    return
  }
  func.func @transform_0(%arg0: i32) -> (i32, i32) {
    %c0_i32 = arith.constant 0 : i32
    %c0_i32_0 = arith.constant 0 : i32
    return %arg0, %c0_i32 : i32, i32
  }
  func.func @transform_1(%arg0: i32) -> (i32, i32) {
    %c0_i32 = arith.constant 0 : i32
    %c0_i32_0 = arith.constant 0 : i32
    %c0_i32_1 = arith.constant 0 : i32
    return %c0_i32, %c0_i32_0 : i32, i32
  }
  func.func @transform_2(%arg0: i32) -> (i32, i32) {
    %c0_i32 = arith.constant 0 : i32
    %c0_i32_0 = arith.constant 0 : i32
    %c0_i32_1 = arith.constant 0 : i32
    return %c0_i32, %c0_i32_0 : i32, i32
  }
  func.func @transform_3(%arg0: i32) -> (i32, i32) {
    %c0_i32 = arith.constant 0 : i32
    %c0_i32_0 = arith.constant 0 : i32
    %c0_i32_1 = arith.constant 0 : i32
    return %c0_i32, %c0_i32_0 : i32, i32
  }
  func.func @transform_4(%arg0: i32) -> (i32, i32) {
    %c0_i32 = arith.constant 0 : i32
    %c0_i32_0 = arith.constant 0 : i32
    %c0_i32_1 = arith.constant 0 : i32
    return %c0_i32, %c0_i32_0 : i32, i32
  }
  func.func @transform_5(%arg0: i32) -> (i32, i32) {
    %c0_i32 = arith.constant 0 : i32
    %c0_i32_0 = arith.constant 0 : i32
    %c0_i32_1 = arith.constant 0 : i32
    return %c0_i32, %c0_i32_0 : i32, i32
  }
  func.func @transform_6(%arg0: i32) -> (i32, i32) {
    %c0_i32 = arith.constant 0 : i32
    %c0_i32_0 = arith.constant 0 : i32
    %c0_i32_1 = arith.constant 0 : i32
    return %c0_i32, %c0_i32_0 : i32, i32
  }
  func.func @transform_7(%arg0: i32) -> (i32, i32) {
    %c0_i32 = arith.constant 0 : i32
    %c0_i32_0 = arith.constant 0 : i32
    return %arg0, %c0_i32 : i32, i32
  }
}

</mosaic_0001>

<bundles_post_ra>
// kernel: tpu_custom_call.1
= control target key start
LH: loop header
LB: loop body
LE: loop exit
PB: predicated region body
PF: predicated region fallthrough
CT: control target
= control target key end

     0   :  { %s2363_s24 = smov 0   ;;  %s2750_s0 = inlined_call_operand.vmem [shape: f32[32,4], index: 0, kind: input, shape index: {}]   ;;  %s2751_s1 = inlined_call_operand.vmem [shape: f32[16,16], index: 1, kind: input, shape index: {}]   ;;  %s2752_s2 = inlined_call_operand.vmem [shape: f32[8,32], index: 2, kind: input, shape index: {}]   ;;  %s2753_s3 = inlined_call_operand.vmem [shape: f32[232,16], index: 3, kind: input, shape index: {}]   ;;  %s2754_s4 = inlined_call_operand.vmem [shape: f32[120,8], index: 4, kind: input, shape index: {}]   ;;  %s2755_s5 = inlined_call_operand.vmem [shape: f32[16,192], index: 5, kind: input, shape index: {}]   ;;  %s2756_s6 = inlined_call_operand.vmem [shape: f32[192,8], index: 6, kind: input, shape index: {}]   ;;  %s2757_s7 = inlined_call_operand.vmem [shape: f32[16,8], index: 7, kind: output, shape index: {}]  }
   0x1 LB: > { %s2369_s25 = sadd.s32 4294967295, %s2315_s24   ;;  %p2024_p0 = scmp.ge.s32.totalorder %s2315_s24, 1  ;;  %s2315_s24 = sphi %s2363_s24, %s17_s24  }
   0x2   : > { %p238_p1 = scmp.lt.s32.totalorder %s2315_s24, 3 }
   0x4   : > { %p239_p2 = pnand %p2024_p0, %p238_p1 }
   0x5   : > { %s2025_s28 = sshll.u32 (!%p239_p2), %s2369_s25, 1  ;;  %s2318_s23 = smov (!%p239_p2), 32  }
   0x6   : > { %242 = sbr.rel (%p239_p2) target bundleno = 1523 (0x5f3), region = 48  ;;  %p270_p3 = scmp.lt.s32.totalorder (!%p239_p2), %s2025_s28, 3 }
   0x7   : > { %s2319_s8 = smov (!%p239_p2), 48   ;;  %p275_p4 = scmp.lt.s32.totalorder (!%p239_p2), %s2369_s25, 1 }
   0xb   : > { %v281_v0 = vld [vmem:[%s2752_s2] sm:$0xf]  ;;  %vm289_vm0 = vcmask 1043456   ;;  %s2759_s28 = smov (!%p270_p3, %s2025_s28), 3  ;;  %vm282_vm1 = vcmask 31744   ;;  %vm375_vm2 = vcmask 130048  }
   0xc   : > { %2150 = vmatprep.subr.msk.mxu0 %vm289_vm0, %v281_v0  ;;  %s2026_s29 = sshll.u32 %s2759_s28, 3  ;;  %v368_v3 = vld [vmem:[%s2751_s1] sm:$0xff]  ;;  %v369_v6 = vld [vmem:[%s2751_s1 + $0x8] sm:$0xff]  ;;  %v466_v7 = vld [vmem:[%s2753_s3 + $0x38] sm:$0xff]  ;;  %v2317_v19 = vmov 0.0   ;;  %vm470_vm3 = vcmask 1041408  }
   0xd   : > { %2151 = vmatpush3.msk.msra.mxu0 %vm289_vm0, %v281_v0  ;;  %s273_s9 = scalar_lea.vmem %s2750_s0, %s2026_s29  ;;  %2159 = vmatprep.mubr.msk.f32.mxu1 %vm375_vm2, %v368_v3  ;;  %v465_v8 = vld [vmem:[%s2753_s3 + $0x30] sm:$0xff]  ;;  %v464_v9 = vld [vmem:[%s2753_s3 + $0x28] sm:$0xff]  ;;  %v463_v10 = vld [vmem:[%s2753_s3 + $0x20] sm:$0xff]  ;;  %v471_v20 = vrot.slane %v2317_v19, 6  ;;  %v557_v21 = vrot.slane %v2317_v19, 5  ;;  %vm476_vm4 = vcmask 261120  }
   0xe   : > { %v279_v1 = vld [vmem:[%s273_s9] sm:$0xff]  ;;  %v280_v2 = vld [vmem:[%s273_s9 + $0x8] sm:$0xff]  ;;  %2162 = vmatprep.subr.mxu0 %v466_v7  ;;  %v462_v11 = vld [vmem:[%s2753_s3 + $0x18] sm:$0xff]  ;;  %vm556_vm5 = vcmask 1042432   ;;  %v646_v31 = vrot.slane %v2317_v19, 7  ;;  %vm645_vm6 = vcmask 1040384  }
   0xf   : > { %2152 = vmatprep.mubr.msk.f32.mxu0 %vm282_vm1, %v279_v1  ;;  %v2031_v12 = vld [vmem:[%s2752_s2 + $0x4] ss:$0 sm:$0xff]  ;;  %v461_v27 = vld [vmem:[%s2753_s3 + $0x10] sm:$0xff]  ;;  %v460_v29 = vld [vmem:[%s2753_s3 + $0x8] sm:$0xff]  ;;  %vm821_vm7 = vcmask 1046528   ;;  %v2487_v53 = vrot.slane %v2317_v19, 1 }
  0x10   : > { %2153 = vmatmul.mubr.msk.f32.vlgmr.msra.gmra.mxu0 %vm282_vm1, %v280_v2  ;;  %v459_v30 = vld [vmem:[%s2753_s3] sm:$0xff]  ;;  %v644_v34 = vld [vmem:[%s2753_s3 + $0x58] sm:$0xff]  ;;  %v643_v36 = vld [vmem:[%s2753_s3 + $0x50] sm:$0xff]  ;;  %vm912_vm8 = vcmask 1045504   ;;  %v916_v62 = vrot.slane %v2317_v19, 2  ;;  %vm1003_vm9 = vcmask 1044480  }
  0x11   : > { %2163 = vmatpush3.msra.mxu0 %v466_v7  ;;  %v642_v38 = vld [vmem:[%s2753_s3 + $0x48] sm:$0xff]  ;;  %v641_v39 = vld [vmem:[%s2753_s3 + $0x40] sm:$0xff]  ;;  %v735_v41 = vld [vmem:[%s2753_s3 + $0x78] sm:$0xff]  ;;  %v1007_v7 = vrot.slane %v2317_v19, 3  ;;  %vm1759_vm10 = vcmask 392192   ;;  %vm1762_vm12 = vcmask 457728  }
  0x12   : > { %2164 = vmatprep.subr.mxu0 %v465_v8  ;;  %v734_v43 = vld [vmem:[%s2753_s3 + $0x70] sm:$0xff]  ;;  %v733_v44 = vld [vmem:[%s2753_s3 + $0x68] sm:$0xff]  ;;  %v732_v45 = vld [vmem:[%s2753_s3 + $0x60] sm:$0xff]  ;;  %vm1765_vm13 = vcmask 465920   ;;  %s2320_s9 = smov 64   ;;  %vm1776_vm14 = vcmask 523264  }
  0x13   : > { %2165 = vmatpush3.msra.mxu0 %v465_v8  ;;  %v820_v47 = vld [vmem:[%s2753_s3 + $0x98] sm:$0xff]  ;;  %v819_v49 = vld [vmem:[%s2753_s3 + $0x90] sm:$0xff]  ;;  %v818_v51 = vld [vmem:[%s2753_s3 + $0x88] sm:$0xff]  ;;  %vm2321_vm15 = vmmov 0   ;;  %s2761_s25 = smov (!%p275_p4, %s2369_s25), 1 }
  0x14   : > { %2166 = vmatprep.subr.mxu0 %v464_v9  ;;  %v817_v52 = vld [vmem:[%s2753_s3 + $0x80] sm:$0xff]  ;;  %v911_v55 = vld [vmem:[%s2753_s3 + $0xb8] sm:$0xff]  ;;  %v910_v58 = vld [vmem:[%s2753_s3 + $0xb0] sm:$0xff]  ;;  %s2027_s16 = sshll.u32 %s2761_s25, 3 }
  0x15   : > { %2167 = vmatpush3.msra.mxu0 %v464_v9  ;;  %v909_v60 = vld [vmem:[%s2753_s3 + $0xa8] sm:$0xff]  ;;  %v908_v61 = vld [vmem:[%s2753_s3 + $0xa0] sm:$0xff]  ;;  %v1002_v0 = vld [vmem:[%s2753_s3 + $0xd8] sm:$0xff]  ;;  %s278_s19 = scalar_lea.vmem %s2757_s7, %s2027_s16 }
  0x16   : > { %2168 = vmatprep.subr.mxu0 %v463_v10  ;;  %v1001_v3 = vld [vmem:[%s2753_s3 + $0xd0] sm:$0xff]  ;;  %v1114_v9 = vld [vmem:[%s2754_s4 + $0x18] sm:$0xff] }
  0x17   : > { %2169 = vmatpush3.msra.mxu0 %v463_v10  ;;  %v1287_v10 = vld [vmem:[%s2754_s4 + $0x28] sm:$0xff] }
  0x18   : > { %2173 = vmatprep.subr.mxu0 %v462_v11 }
  0xd0   : > { %v2154_v4 = vpop.f32.mrf.mxu0 }
  0xd1   : > { %2155 = vmatprep.subr.mxu1 %v2154_v4 }
  0xd2   : > { %v359_v5 = vpop.f32.mrf.mxu0  ;;  %2156 = vmatpush3.msra.mxu1 %v2154_v4 }
  0xd3   : > { %2157 = vmatprep.subr.mxu1 %v359_v5 }
  0xd4   : > { %2158 = vmatpush3.msra.mxu1 %v359_v5  ;;  %v1000_v5 = vld [vmem:[%s2753_s3 + $0xc8] sm:$0xff] }
  0xd5   : > { %2160 = vmatmul.mubr.msk.f32.vlgmr.msra.gmra.mxu1 %vm375_vm2, %v369_v6  ;;  %v999_v6 = vld [vmem:[%s2753_s3 + $0xc0] sm:$0xff]  ;;  %2239 = vmatprep.subr.mxu1 %v1114_v9 }
  0xd6   : > { %2240 = vmatpush3.msra.mxu1 %v1114_v9  ;;  %v1111_v9 = vld [vmem:[%s2754_s4] sm:$0xff] }
 0x195   : > { %v2161_v13 = vpop.f32.mrf.mxu1 }
 0x196   : > { %v454_v14 = vadd.f32 %v2161_v13, %v2031_v12  ;;  %v2545_v13 = vld [vmem:[%s2754_s4 + $0x8] sm:$0xff] }
 0x197   : > { %v448_v15 = vpop.f32.mrf.mxu1 }
 0x198   : > { %v2408_v16 = vmax.f32 %v454_v14, 0.0  ;;  %v449_v17 = vadd.f32 %v2031_v12, %v448_v15  ;;  %v1286_v12 = vld [vmem:[%s2754_s4 + $0x20] sm:$0xff]  ;;  %v2550_v14 = vld [vmem:[%s2754_s4 + $0x48] sm:$0xff] }
 0x19a   : > { %v2410_v18 = vmax.f32 %v449_v17, 0.0  ;;  %v474_v23 = vrot.slane %v2408_v16, 6  ;;  %v560_v33 = vrot.slane %v2408_v16, 5  ;;  %v649_v40 = vrot.slane %v2408_v16, 7 }
 0x19b   : > { %v823_v48 = vrot.slane %v2408_v16, 1  ;;  %v914_v56 = vrot.slane %v2408_v16, 2  ;;  %v1005_v1 = vrot.slane %v2408_v16, 3 }
 0x19c   : > { %v472_v22 = vrot.slane %v2410_v18, 6  ;;  %v558_v24 = vrot.slane %v2410_v18, 5  ;;  %v647_v32 = vrot.slane %v2410_v18, 7  ;;  %v822_v46 = vrot.slane %v2410_v18, 1 }
 0x19d   : > { %v913_v54 = vrot.slane %v2410_v18, 2  ;;  %v826_v57 = vsel %vm821_vm7, %v823_v48, %v2487_v53  ;;  %v1004_v63 = vrot.slane %v2410_v18, 3  ;;  %v917_v2 = vsel %vm912_vm8, %v914_v56, %v916_v62 }
 0x19e   : > { %v473_v25 = vsel %vm470_vm3, %v471_v20, %v472_v22  ;;  %v475_v26 = vsel %vm470_vm3, %v472_v22, %v474_v23  ;;  %v559_v28 = vsel %vm556_vm5, %v557_v21, %v558_v24  ;;  %v561_v35 = vsel %vm556_vm5, %v558_v24, %v560_v33 }
 0x19f   : > { %2170 = vmatprep.mubr.msk.f32.mxu0 %vm476_vm4, %v473_v25  ;;  %v648_v37 = vsel %vm645_vm6, %v646_v31, %v647_v32  ;;  %v650_v42 = vsel %vm645_vm6, %v647_v32, %v649_v40  ;;  %v824_v50 = vsel %vm821_vm7, %v822_v46, %v823_v48  ;;  %v915_v59 = vsel %vm912_vm8, %v913_v54, %v914_v56  ;;  %v2048_v40 = vld [vmem:[%s2753_s3 + $0xe0] ss:$0 sm:$0xff] }
 0x1a0   : > { %2171 = vmatmul.mubr.msk.f32.vlgmr.msra.gmra.mxu0 %vm476_vm4, %v475_v26  ;;  %v1006_v4 = vsel %vm1003_vm9, %v1004_v63, %v1005_v1  ;;  %v1008_v8 = vsel %vm1003_vm9, %v1005_v1, %v1007_v7 }
 0x1a1   : > { %2174 = vmatpush3.msra.mxu0 %v462_v11  ;;  %2181 = vmatprep.mubr.msk.f32.mxu0 %vm476_vm4, %v559_v28  ;;  %v1113_v11 = vld [vmem:[%s2754_s4 + $0x10] sm:$0xff] }
 0x1a2   : > { %2175 = vmatprep.subr.mxu0 %v461_v27  ;;  %2241 = vmatprep.subr.mxu1 %v1113_v11 }
 0x1a3   : > { %2176 = vmatpush3.msra.mxu0 %v461_v27  ;;  %2242 = vmatpush3.msra.mxu1 %v1113_v11 }
 0x1a4   : > { %2177 = vmatprep.subr.mxu0 %v460_v29  ;;  %2246 = vmatprep.subr.mxu1 %v2545_v13 }
 0x1a5   : > { %2178 = vmatpush3.msra.mxu0 %v460_v29 }
 0x1a6   : > { %2179 = vmatprep.subr.mxu0 %v459_v30 }
 0x1a7   : > { %2180 = vmatpush3.msra.mxu0 %v459_v30 }
 0x1a8   : > { %2182 = vmatmul.mubr.msk.f32.vlgmr.msra.gmra.mxu0 %vm476_vm4, %v561_v35  ;;  %2184 = vmatprep.subr.mxu0 %v644_v34 }
 0x1a9   : > { %2185 = vmatpush3.msra.mxu0 %v644_v34  ;;  %2192 = vmatprep.mubr.msk.f32.mxu0 %vm476_vm4, %v648_v37 }
 0x1aa   : > { %2186 = vmatprep.subr.mxu0 %v643_v36 }
 0x1ab   : > { %2187 = vmatpush3.msra.mxu0 %v643_v36 }
 0x1ac   : > { %2188 = vmatprep.subr.mxu0 %v642_v38 }
 0x1ad   : > { %2189 = vmatpush3.msra.mxu0 %v642_v38 }
 0x1ae   : > { %2190 = vmatprep.subr.mxu0 %v641_v39 }
 0x1af   : > { %2191 = vmatpush3.msra.mxu0 %v641_v39 }
 0x1b0   : > { %2193 = vmatmul.mubr.msk.f32.vlgmr.msra.gmra.mxu0 %vm476_vm4, %v650_v42  ;;  %2195 = vmatprep.subr.mxu0 %v735_v41 }
 0x1b1   : > { %2196 = vmatpush3.msra.mxu0 %v735_v41  ;;  %2203 = vmatprep.mubr.msk.f32.mxu0 %vm476_vm4, %v2410_v18 }
 0x1b2   : > { %2197 = vmatprep.subr.mxu0 %v734_v43 }
 0x1b3   : > { %2198 = vmatpush3.msra.mxu0 %v734_v43 }
 0x1b4   : > { %2199 = vmatprep.subr.mxu0 %v733_v44 }
 0x1b5   : > { %2200 = vmatpush3.msra.mxu0 %v733_v44 }
 0x1b6   : > { %2201 = vmatprep.subr.mxu0 %v732_v45 }
 0x1b7   : > { %2202 = vmatpush3.msra.mxu0 %v732_v45 }
 0x1b8   : > { %2204 = vmatmul.mubr.msk.f32.vlgmr.msra.gmra.mxu0 %vm476_vm4, %v2408_v16  ;;  %2206 = vmatprep.subr.mxu0 %v820_v47 }
 0x1b9   : > { %2207 = vmatpush3.msra.mxu0 %v820_v47  ;;  %2214 = vmatprep.mubr.msk.f32.mxu0 %vm476_vm4, %v824_v50 }
 0x1ba   : > { %2208 = vmatprep.subr.mxu0 %v819_v49 }
 0x1bb   : > { %2209 = vmatpush3.msra.mxu0 %v819_v49 }
 0x1bc   : > { %2210 = vmatprep.subr.mxu0 %v818_v51 }
 0x1bd   : > { %2211 = vmatpush3.msra.mxu0 %v818_v51 }
 0x1be   : > { %2212 = vmatprep.subr.mxu0 %v817_v52 }
 0x1bf   : > { %2213 = vmatpush3.msra.mxu0 %v817_v52 }
 0x1c0   : > { %2215 = vmatmul.mubr.msk.f32.vlgmr.msra.gmra.mxu0 %vm476_vm4, %v826_v57  ;;  %2217 = vmatprep.subr.mxu0 %v911_v55 }
 0x1c1   : > { %2218 = vmatpush3.msra.mxu0 %v911_v55  ;;  %2225 = vmatprep.mubr.msk.f32.mxu0 %vm476_vm4, %v915_v59 }
 0x1c2   : > { %2219 = vmatprep.subr.mxu0 %v910_v58 }
 0x1c3   : > { %2220 = vmatpush3.msra.mxu0 %v910_v58 }
 0x1c4   : > { %2221 = vmatprep.subr.mxu0 %v909_v60 }
 0x1c5   : > { %2222 = vmatpush3.msra.mxu0 %v909_v60 }
 0x1c6   : > { %2223 = vmatprep.subr.mxu0 %v908_v61 }
 0x1c7   : > { %2224 = vmatpush3.msra.mxu0 %v908_v61 }
 0x1c8   : > { %2226 = vmatmul.mubr.msk.f32.vlgmr.msra.gmra.mxu0 %vm476_vm4, %v917_v2  ;;  %2228 = vmatprep.subr.mxu0 %v1002_v0 }
 0x1c9   : > { %2229 = vmatpush3.msra.mxu0 %v1002_v0  ;;  %2236 = vmatprep.mubr.msk.f32.mxu0 %vm476_vm4, %v1006_v4 }
 0x1ca   : > { %2230 = vmatprep.subr.mxu0 %v1001_v3 }
 0x1cb   : > { %2231 = vmatpush3.msra.mxu0 %v1001_v3  ;;  %v1462_v3 = vmax.f32 %v2487_v53, 0.0 }
 0x1cc   : > { %2232 = vmatprep.subr.mxu0 %v1000_v5 }
 0x1cd   : > { %2233 = vmatpush3.msra.mxu0 %v1000_v5 }
 0x1ce   : > { %2234 = vmatprep.subr.mxu0 %v999_v6 }
 0x1cf   : > { %2235 = vmatpush3.msra.mxu0 %v999_v6 }
 0x1d0   : > { %2237 = vmatmul.mubr.msk.f32.vlgmr.msra.gmra.mxu0 %vm476_vm4, %v1008_v8  ;;  %2253 = vmatprep.subr.mxu0 %v1287_v10 }
 0x1d1   : > { %2254 = vmatpush3.msra.mxu0 %v1287_v10  ;;  %v1463_v10 = vld [vmem:[%s2754_s4 + $0x40] sm:$0xff] }
 0x1d2   : > { %2255 = vmatprep.subr.mxu0 %v1286_v12 }
 0x1d3   : > { %2256 = vmatpush3.msra.mxu0 %v1286_v12  ;;  %v1468_v12 = vrot.slane %v1462_v3, 2 }
 0x1d4   : > { %2267 = vmatprep.subr.mxu0 %v2550_v14 }
 0x260   : > { %v2172_v15 = vpop.f32.mrf.mxu0 }
 0x262   : > { %v547_v17 = vpop.f32.mrf.mxu0 }
 0x268   : > { %v2183_v20 = vpop.f32.mrf.mxu0 }
 0x269   : > { %v638_v27 = vadd.f32 %v2183_v20, %v2172_v15 }
 0x26a   : > { %v632_v21 = vpop.f32.mrf.mxu0 }
 0x26b   : > { %v633_v29 = vadd.f32 %v632_v21, %v547_v17  ;;  %v1378_v17 = vld [vmem:[%s2754_s4 + $0x38] sm:$0xff] }
 0x270   : > { %v2194_v22 = vpop.f32.mrf.mxu0 }
 0x271   : > { %v731_v30 = vadd.f32 %v2194_v22, %v638_v27  ;;  %v1377_v22 = vld [vmem:[%s2754_s4 + $0x30] sm:$0xff] }
 0x272   : > { %v721_v23 = vpop.f32.mrf.mxu0 }
 0x273   : > { %v730_v32 = vadd.f32 %v721_v23, %v633_v29  ;;  %v1638_v23 = vld [vmem:[%s2754_s4 + $0x60] sm:$0xff]  ;;  %v1555_v29 = vrot.slane %v1462_v3, 4 }
 0x278   : > { %v2205_v24 = vpop.f32.mrf.mxu0 }
 0x279   : > { %v816_v33 = vadd.f32 %v2205_v24, %v731_v30 }
 0x27a   : > { %v806_v25 = vpop.f32.mrf.mxu0 }
 0x27b   : > { %v815_v34 = vadd.f32 %v806_v25, %v730_v32  ;;  %v1642_v25 = vrot.slane %v1462_v3, 6  ;;  %v1799_v3 = vld [vmem:[%s2756_s6 + $0x60] sm:$0xff] }
 0x280   : > { %v2216_v26 = vpop.f32.mrf.mxu0 }
 0x281   : > { %v907_v35 = vadd.f32 %v2216_v26, %v816_v33  ;;  %v1552_v26 = vld [vmem:[%s2754_s4 + $0x58] sm:$0xff] }
 0x282   : > { %v897_v28 = vpop.f32.mrf.mxu0 }
 0x283   : > { %v906_v37 = vadd.f32 %v897_v28, %v815_v34  ;;  %v1551_v28 = vld [vmem:[%s2754_s4 + $0x50] sm:$0xff] }
 0x288   : > { %v2227_v31 = vpop.f32.mrf.mxu0 }
 0x289   : > { %v998_v38 = vadd.f32 %v2227_v31, %v907_v35 }
 0x28a   : > { %v988_v36 = vpop.f32.mrf.mxu0 }
 0x28b   : > { %v997_v41 = vadd.f32 %v988_v36, %v906_v37 }
 0x290   : > { %v2238_v39 = vpop.f32.mrf.mxu0 }
 0x291   : > { %v1089_v42 = vadd.f32 %v2238_v39, %v998_v38 }
 0x292   : > { %v1079_v43 = vpop.f32.mrf.mxu0 }
 0x293   : > { %v1096_v44 = vadd.f32 %v2048_v40, %v1089_v42  ;;  %v1088_v45 = vadd.f32 %v1079_v43, %v997_v41 }
 0x295   : > { %v1098_v46 = vmax.f32 %v1096_v44, 0.0  ;;  %v1095_v47 = vadd.f32 %v2048_v40, %v1088_v45 }
 0x297   : > { %v1103_v48 = vrot.slane %v1098_v46, 1  ;;  %v1097_v49 = vmax.f32 %v1095_v47, 0.0 }
 0x299   : > { %v1110_v50 = vmax.f32 %v1098_v46, %v1103_v48  ;;  %v1374_v51 = vsel %vm821_vm7, %v1103_v48, %v2487_v53  ;;  %v1101_v52 = vrot.slane %v1097_v49, 1 }
 0x29a   : > { %v2559_v54 = vmax.f32 %v1098_v46, %v1374_v51 }
 0x29b   : > { %v1102_v55 = vsel %vm821_vm7, %v2487_v53, %v1101_v52  ;;  %v1104_v56 = vsel %vm821_vm7, %v1101_v52, %v1103_v48  ;;  %v1121_v59 = vrot.slane %v1110_v50, 4  ;;  %v1291_v60 = vrot.slane %v1110_v50, 6 }
 0x29c   : > { %v1108_v57 = vmax.f32 %v1102_v55, 0.0  ;;  %v1109_v58 = vmax.f32 %v1097_v49, %v1104_v56  ;;  %1745 = vrot.lane.b32.xlu1 %v2559_v54, %s2318_s23  ;;  %v1466_v8 = vrot.slane %v2559_v54, 2  ;;  %v1205_v15 = vrot.slane %v1110_v50, 2  ;;  %v2063_v56 = vld [vmem:[%s2754_s4 + $0x70] ss:$0 sm:$0xff] }
 0x29d   : > { %v1640_v21 = vrot.slane %v2559_v54, 6  ;;  %v1553_v27 = vrot.slane %v2559_v54, 4 }
 0x29e   : > { %1743 = vrot.lane.b32.xlu0 %v1109_v58, %s2318_s23  ;;  %v1118_v61 = vrot.slane %v1108_v57, 4  ;;  %v1119_v62 = vrot.slane %v1109_v58, 4  ;;  %v1288_v63 = vrot.slane %v1108_v57, 6  ;;  %v1289_v0 = vrot.slane %v1109_v58, 6 }
 0x29f   : > { %v1202_v1 = vrot.slane %v1108_v57, 2  ;;  %v1203_v2 = vrot.slane %v1109_v58, 2  ;;  %v1643_v30 = vsel %vm470_vm3, %v1640_v21, %v1642_v25  ;;  %v1556_v32 = vsel %vm289_vm0, %v1553_v27, %v1555_v29  ;;  %v1805_v25 = vld [vmem:[%s2756_s6 + $0x90] sm:$0xff] }
 0x2a0   : > { %v1120_v4 = vsel %vm289_vm0, %v1118_v61, %v1119_v62  ;;  %v1290_v5 = vsel %vm470_vm3, %v1288_v63, %v1289_v0  ;;  %v1122_v6 = vsel %vm289_vm0, %v1119_v62, %v1121_v59  ;;  %v1292_v7 = vsel %vm470_vm3, %v1289_v0, %v1291_v60  ;;  %v1802_v59 = vld [vmem:[%s2756_s6 + $0x78] sm:$0xff]  ;;  %v1801_v60 = vld [vmem:[%s2756_s6 + $0x70] sm:$0xff] }
 0x2a1   : > { %2243 = vmatprep.mubr.msk.f32.mxu1 %vm375_vm2, %v1120_v4  ;;  %2257 = vmatprep.mubr.msk.f32.mxu0 %vm375_vm2, %v1290_v5  ;;  %v1204_v53 = vsel %vm912_vm8, %v1202_v1, %v1203_v2  ;;  %v1467_v11 = vsel %vm912_vm8, %v1203_v2, %v1466_v8  ;;  %v1206_v20 = vsel %vm912_vm8, %v1203_v2, %v1205_v15  ;;  %v1798_v5 = vld [vmem:[%s2756_s6 + $0x58] sm:$0xff]  ;;  %v1789_v15 = vld [vmem:[%s2756_s6 + $0x10] sm:$0xff] }
 0x2a2   : > { %2244 = vmatmul.mubr.msk.f32.vlgmr.msra.gmra.mxu1 %vm375_vm2, %v1122_v6  ;;  %2258 = vmatmul.mubr.msk.f32.vlgmr.msra.gmra.mxu0 %vm375_vm2, %v1292_v7  ;;  %v1641_v24 = vsel %vm470_vm3, %v1289_v0, %v1640_v21  ;;  %v1554_v31 = vsel %vm289_vm0, %v1119_v62, %v1553_v27  ;;  %v1800_v0 = vld [vmem:[%s2756_s6 + $0x68] sm:$0xff]  ;;  %v1797_v6 = vld [vmem:[%s2756_s6 + $0x50] sm:$0xff]  ;;  %vm1965_vm0 = vcmask 64512  }
 0x2a3   : > { %2247 = vmatpush3.msra.mxu1 %v2545_v13  ;;  %2250 = vmatprep.mubr.msk.f32.mxu1 %vm375_vm2, %v1204_v53  ;;  %v1639_v13 = vld [vmem:[%s2754_s4 + $0x68] sm:$0xff]  ;;  %v1794_v53 = vld [vmem:[%s2756_s6 + $0x38] sm:$0xff] }
 0x2a4   : > { %2268 = vmatpush3.msra.mxu0 %v2550_v14  ;;  %2271 = vmatprep.mubr.msk.f32.mxu0 %vm375_vm2, %v1467_v11  ;;  %v1469_v14 = vsel %vm912_vm8, %v1466_v8, %v1468_v12  ;;  %v1796_v7 = vld [vmem:[%s2756_s6 + $0x48] sm:$0xff]  ;;  %v1795_v8 = vld [vmem:[%s2756_s6 + $0x40] sm:$0xff]  ;;  %v1790_v12 = vld [vmem:[%s2756_s6 + $0x18] sm:$0xff] }
 0x2a5   : > { %2248 = vmatprep.subr.mxu1 %v1111_v9  ;;  %2269 = vmatprep.subr.mxu0 %v1463_v10  ;;  %v1791_v11 = vld [vmem:[%s2756_s6 + $0x20] sm:$0xff]  ;;  %v1808_v21 = vld [vmem:[%s2756_s6 + $0xa8] sm:$0xff] }
 0x2a6   : > { %2249 = vmatpush3.msra.mxu1 %v1111_v9  ;;  %2270 = vmatpush3.msra.mxu0 %v1463_v10  ;;  %v1793_v9 = vld [vmem:[%s2756_s6 + $0x30] sm:$0xff]  ;;  %v1792_v10 = vld [vmem:[%s2756_s6 + $0x28] sm:$0xff] }
 0x2a7   : > { %2251 = vmatmul.mubr.msk.f32.vlgmr.msra.gmra.mxu1 %vm375_vm2, %v1206_v20  ;;  %2260 = vmatprep.subr.mxu1 %v1378_v17  ;;  %v1810_v20 = vld [vmem:[%s2756_s6 + $0xb8] sm:$0xff] }
 0x2a8   : > { %2272 = vmatmul.mubr.msk.f32.vlgmr.msra.gmra.mxu0 %vm375_vm2, %v1469_v14  ;;  %2281 = vmatprep.subr.mxu0 %v1639_v13  ;;  %v1809_v14 = vld [vmem:[%s2756_s6 + $0xb0] sm:$0xff] }
 0x2a9   : > { %2261 = vmatpush3.msra.mxu1 %v1378_v17  ;;  %2264 = vmatprep.mubr.msk.f32.mxu1 %vm375_vm2, %v1109_v58  ;;  %v1788_v17 = vld [vmem:[%s2756_s6 + $0x8] sm:$0xff] }
 0x2aa   : > { %2282 = vmatpush3.msra.mxu0 %v1639_v13  ;;  %2285 = vmatprep.mubr.msk.f32.mxu0 %vm375_vm2, %v1641_v24  ;;  %v1787_v13 = vld [vmem:[%s2756_s6] sm:$0xff]  ;;  %v1734_v24 = vlaneseq }
 0x2ab   : > { %2262 = vmatprep.subr.mxu1 %v1377_v22  ;;  %2283 = vmatprep.subr.mxu0 %v1638_v23 }
 0x2ac   : > { %2263 = vmatpush3.msra.mxu1 %v1377_v22  ;;  %2284 = vmatpush3.msra.mxu0 %v1638_v23  ;;  %v1807_v22 = vld [vmem:[%s2756_s6 + $0xa0] sm:$0xff]  ;;  %v1806_v23 = vld [vmem:[%s2756_s6 + $0x98] sm:$0xff]  ;;  %v1735_v27 = vshrl.u32 %v1734_v24, 7 }
 0x2ad   : > { %2265 = vmatmul.mubr.msk.f32.vlgmr.msra.gmra.mxu1 %vm375_vm2, %v2559_v54  ;;  %2274 = vmatprep.subr.mxu1 %v1552_v26 }
 0x2ae   : > { %2286 = vmatmul.mubr.msk.f32.vlgmr.msra.gmra.mxu0 %vm375_vm2, %v1643_v30  ;;  %2275 = vmatpush3.msra.mxu1 %v1552_v26  ;;  %v1804_v26 = vld [vmem:[%s2756_s6 + $0x88] sm:$0xff]  ;;  %vm1737_vm11 = vcmp.eq.s32.totalorder %v1735_v27, 0 }
 0x2af   : > { %2278 = vmatprep.mubr.msk.f32.mxu1 %vm375_vm2, %v1554_v31  ;;  %2276 = vmatprep.subr.mxu1 %v1551_v28 }
 0x2b0   : > { %2277 = vmatpush3.msra.mxu1 %v1551_v28  ;;  %2288 = vmatprep.subr.mxu0 %v2317_v19  ;;  %v1803_v28 = vld [vmem:[%s2756_s6 + $0x80] sm:$0xff] }
 0x2b1   : > { %2279 = vmatmul.mubr.msk.f32.vlgmr.msra.gmra.mxu1 %vm375_vm2, %v1556_v32  ;;  %1817 = vmatprep.subr.mxu1 %v2317_v19 }
 0x2b2   : > { %1818 = vmatpush1.msra.mxu1 %v1802_v59  ;;  %2292 = vmatprep.mubr.msk.f32.mxu0 %vm2321_vm15, %v2317_v19 }
 0x2b3   : > { %1819 = vmatprep.subr.mxu1 %v2317_v19 }
 0x2b4   : > { %1820 = vmatpush1.msra.mxu1 %v1801_v60 }
 0x2b5   : > { %1821 = vmatprep.subr.mxu1 %v2317_v19 }
 0x2b6   : > { %1822 = vmatpush1.msra.mxu1 %v1800_v0 }
 0x2b7   : > { %1823 = vmatprep.subr.mxu1 %v2317_v19 }
 0x2b8   : > { %1824 = vmatpush1.msra.mxu1 %v1799_v3 }
 0x2b9   : > { %1825 = vmatprep.subr.mxu1 %v2317_v19 }
 0x2ba   : > { %1826 = vmatpush1.msra.mxu1 %v1798_v5 }
 0x2bb   : > { %1827 = vmatprep.subr.mxu1 %v2317_v19 }
 0x2bc   : > { %1828 = vmatpush1.msra.mxu1 %v1797_v6 }
 0x2bd   : > { %1829 = vmatprep.subr.mxu1 %v2317_v19 }
 0x2be   : > { %1830 = vmatpush1.msra.mxu1 %v1796_v7 }
 0x2bf   : > { %1831 = vmatprep.subr.mxu1 %v2317_v19 }
 0x2c0   : > { %1832 = vmatpush1.msra.mxu1 %v1795_v8 }
 0x2c1   : > { %1833 = vmatprep.subr.mxu1 %v2317_v19 }
 0x2c2   : > { %1834 = vmatpush1.msra.mxu1 %v1794_v53 }
 0x2c3   : > { %1835 = vmatprep.subr.mxu1 %v2317_v19 }
 0x2c4   : > { %1836 = vmatpush1.msra.mxu1 %v1793_v9 }
 0x2c5   : > { %1837 = vmatprep.subr.mxu1 %v2317_v19 }
 0x2c6   : > { %1838 = vmatpush1.msra.mxu1 %v1792_v10 }
 0x2c7   : > { %1839 = vmatprep.subr.mxu1 %v2317_v19 }
 0x2c8   : > { %1840 = vmatpush1.msra.mxu1 %v1791_v11 }
 0x2c9   : > { %1841 = vmatprep.subr.mxu1 %v2317_v19 }
 0x2ca   : > { %1842 = vmatpush1.msra.mxu1 %v1790_v12 }
 0x2cb   : > { %1843 = vmatprep.subr.mxu1 %v2317_v19 }
 0x2cc   : > { %1844 = vmatpush1.msra.mxu1 %v1789_v15 }
 0x2cd   : > { %1845 = vmatprep.subr.mxu1 %v2317_v19 }
 0x2ce   : > { %1846 = vmatpush1.msra.mxu1 %v1788_v17 }
 0x2cf   : > { %1847 = vmatprep.subr.mxu1 %v2317_v19 }
 0x2d0   : > { %1848 = vmatpush1.msra.mxu1 %v1787_v13 }
 0x2d1   : > { %1865 = vmatprep.subr.mxu1 %v2317_v19 }
 0x2d2   : > { %1866 = vmatpush2.msra.mxu1 %v1810_v20 }
 0x2d3   : > { %1867 = vmatprep.subr.mxu1 %v2317_v19 }
 0x2d4   : > { %1868 = vmatpush2.msra.mxu1 %v1809_v14 }
 0x2d5   : > { %1869 = vmatprep.subr.mxu1 %v2317_v19 }
 0x2d6   : > { %1870 = vmatpush2.msra.mxu1 %v1808_v21 }
 0x2d7   : > { %1871 = vmatprep.subr.mxu1 %v2317_v19 }
 0x2d8   : > { %1872 = vmatpush2.msra.mxu1 %v1807_v22 }
 0x2d9   : > { %1873 = vmatprep.subr.mxu1 %v2317_v19 }
 0x2da   : > { %1874 = vmatpush2.msra.mxu1 %v1806_v23 }
 0x2db   : > { %1875 = vmatprep.subr.mxu1 %v2317_v19 }
 0x2dc   : > { %1876 = vmatpush2.msra.mxu1 %v1805_v25 }
 0x2dd   : > { %1877 = vmatprep.subr.mxu1 %v2317_v19 }
 0x2de   : > { %1878 = vmatpush2.msra.mxu1 %v1804_v26 }
 0x2df   : > { %1879 = vmatprep.subr.mxu1 %v2317_v19 }
 0x2e0   : > { %1880 = vmatpush2.msra.mxu1 %v1803_v28 }
 0x30e   : > { %v1746_v29 = vpop.permute.xlu1 %1745 }
 0x30f   : > { %v1758_v31 = vsel %vm476_vm4, %v2408_v16, %v1746_v29 }
 0x310   : > { %v1744_v30 = vpop.permute.xlu0 %1743 }
 0x362   : > { %v2245_v33 = vpop.f32.mrf.mxu1  ;;  %v2259_v34 = vpop.f32.mrf.mxu0 }
 0x364   : > { %v1193_v35 = vpop.f32.mrf.mxu1  ;;  %v1363_v36 = vpop.f32.mrf.mxu0 }
 0x367   : > { %v2252_v37 = vpop.f32.mrf.mxu1 }
 0x368   : > { %v1283_v38 = vadd.f32 %v2252_v37, %v2245_v33  ;;  %v2273_v39 = vpop.f32.mrf.mxu0 }
 0x369   : > { %v1277_v40 = vpop.f32.mrf.mxu1 }
 0x36a   : > { %v1278_v41 = vadd.f32 %v1277_v40, %v1193_v35  ;;  %v1373_v42 = vadd.f32 %v2259_v34, %v1283_v38  ;;  %v1540_v44 = vpop.f32.mrf.mxu0  ;;  %v2064_v34 = vsel %vm1737_vm11, 1.0, %v2317_v19  ;;  %v1757_v35 = vsel %vm476_vm4, %v2410_v18, %v1744_v30  ;;  %v1780_v40 = vld [vmem:[%s2755_s5 + $0x8] sm:$0xff]  ;;  %v1779_v18 = vld [vmem:[%s2755_s5] sm:$0xff] }
 0x36c   : > { %v1372_v43 = vadd.f32 %v1363_v36, %v1278_v41 }
 0x36d   : > { %v2266_v45 = vpop.f32.mrf.mxu1 }
 0x36e   : > { %v1460_v46 = vadd.f32 %v2266_v45, %v1373_v42  ;;  %v2287_v50 = vpop.f32.mrf.mxu0 }
 0x36f   : > { %v1450_v47 = vpop.f32.mrf.mxu1 }
 0x370   : > { %v1459_v48 = vadd.f32 %v1450_v47, %v1372_v43  ;;  %v1550_v49 = vadd.f32 %v2273_v39, %v1460_v46  ;;  %v1714_v61 = vpop.f32.mrf.mxu0  ;;  %v1782_v43 = vld [vmem:[%s2755_s5 + $0x18] sm:$0xff] }
 0x371   : > { %v2280_v51 = vpop.f32.mrf.mxu1 }
 0x372   : > { %v1637_v52 = vadd.f32 %v2280_v51, %v1550_v49  ;;  %v1549_v54 = vadd.f32 %v1540_v44, %v1459_v48  ;;  %v1781_v49 = vld [vmem:[%s2755_s5 + $0x10] sm:$0xff] }
 0x373   : > { %v1627_v55 = vpop.f32.mrf.mxu1 }
 0x374   : > { %v1724_v57 = vadd.f32 %v2287_v50, %v1637_v52  ;;  %v1636_v58 = vadd.f32 %v1627_v55, %v1549_v54 }
 0x376   : > { %v1723_v62 = vadd.f32 %v1714_v61, %v1636_v58  ;;  %v1731_v63 = vadd.f32 %v2063_v56, %v1724_v57  ;;  %v2322_v57 = vmov 1.0  }
 0x378   : > { %v1733_v1 = vmax.f32 %v1731_v63, 0.0  ;;  %v1730_v2 = vadd.f32 %v2063_v56, %v1723_v62 }
 0x37a   : > { %1753 = vrot.lane.b32.xlu1 %v1733_v1, %s2319_s8  ;;  %v1732_v4 = vmax.f32 %v1730_v2, 0.0 }
 0x37c   : > { %1751 = vrot.lane.b32.xlu0 %v1732_v4, %s2319_s8 }
 0x3ec   : > { %v1754_v32 = vpop.permute.xlu1 %1753 }
 0x3ed   : > { %v1761_v33 = vsel %vm1759_vm10, %v1758_v31, %v1754_v32 }
 0x3ee   : > { %v1752_v36 = vpop.permute.xlu0 %1751  ;;  %v1764_v37 = vsel %vm1762_vm12, %v1761_v33, 0.0 }
 0x3ef   : > { %v1760_v38 = vsel %vm1759_vm10, %v1757_v35, %v1752_v36  ;;  %v1767_v39 = vsel %vm1765_vm13, %v1764_v37, 0.0 }
 0x3f0   : > { %1772 = vrot.lane.b32.xlu1 %v1767_v39, %s2320_s9  ;;  %v1763_v41 = vsel %vm1762_vm12, %v1760_v38, %v2064_v34  ;;  %v1786_v48 = vmul.f32 %v1782_v43, %v1767_v39 }
 0x3f1   : > { %v1766_v16 = vsel %vm1765_vm13, %v1763_v41, 0.0 }
 0x3f2   : > { %1770 = vrot.lane.b32.xlu0 %v1766_v16, %s2320_s9  ;;  %v1784_v42 = vmul.f32 %v1780_v40, %v1766_v16 }
 0x3f4   : > { %2065 = vmatprep.mubr.msk.f32.mxu1 %vm1776_vm14, %v1784_v42 }
 0x462   : > { %v1773_v44 = vpop.permute.xlu1 %1772 }
 0x463   : > { %v1778_v50 = vsel %vm1776_vm14, %v1767_v39, %v1773_v44 }
 0x464   : > { %v1771_v45 = vpop.permute.xlu0 %1770  ;;  %v1785_v51 = vmul.f32 %v1781_v49, %v1778_v50 }
 0x465   : > { %v1777_v46 = vsel %vm1776_vm14, %v1766_v16, %v1771_v45 }
 0x466   : > { %v1783_v47 = vmul.f32 %v1779_v18, %v1777_v46 }
 0x468   : > { %1882 = vmatmul.mubr.f32.vlgmr.msra.gmra.mxu1 %v1783_v47 }
 0x469   : > { %2066 = vmatprep.mubr.msk.f32.mxu1 %vm1776_vm14, %v1786_v48 }
 0x46c   : > { %1887 = vmatmul.mubr.f32.gmra.mxu1 %v1785_v51 }
 0x528   : > { %v1883_v52 = vpop.f32.mrf.mxu1 }
 0x52a   : > { %v1885_v54 = vpop.f32.mrf.mxu1 }
 0x52c   : > { %v1888_v55 = vpop.f32.mrf.mxu1 }
 0x52d   : > { %2289 = vmatpush3.msra.mxu0 %v1888_v55 }
 0x52e   : > { %v1890_v56 = vpop.f32.mrf.mxu1  ;;  %2290 = vmatprep.subr.mxu0 %v2317_v19 }
 0x52f   : > { %2291 = vmatpush3.msra.mxu0 %v1883_v52 }
 0x530   : > { %2293 = vmatmul.mubr.msk.f32.vlgmr.msra.gmra.mxu0 %vm375_vm2, %v2322_v57 }
 0x5f0   : > { %v1961_v58 = vpop.f32.mrf.mxu0 }
 0x5f1   : > { %1966 = vst.msk [vmem:[%s278_s19] sm:$0xff] %vm1965_vm0, %v1961_v58 }
 0x5f2   : > { %v2294_v59 = vpop.f32.mrf.mxu0 }
 0x5f3 PF: > { %s17_s24 = sadd.s32 1, %s2315_s24  }
 0x5f4   : > { %p14_p5 = scmp.ge.s32.totalorder %s17_s24, 4  }
 0x5f6   :  { %16 = sbr.rel (!%p14_p5) target bundleno = 1 (0x1), region = 78 }

</bundles_post_ra>
